<compile_context>
chip_gen: v6e
topology: v6e:2x2x1
jax: 0.10.0
libtpu: 0.0.40
codegen_flags: <defaults>
</compile_context>

<pallas_src>
import functools

import jax
import jax.numpy as jnp
from jax import lax
from jax.experimental import pallas as pl
from jax.experimental.pallas import tpu as pltpu


def _conv_stats_kernel(x_ref, w_ref, y_ref, s_ref, *, neg_slope):
    """One M-tile: LeakyReLU -> single K=KH*KW*Cin matmul -> f32 conv tile + partial BN stats.

    x_ref : (tm, K)     bf16 im2col patches for this tile (activation not yet applied)
    w_ref : (K, Cpad)   bf16 folded conv weights (resident across tiles)
    y_ref : (tm, Cpad)  f32 conv output tile (pre-BN), lane-dense
    s_ref : (2, Cpad)   f32 per-tile partial stats: row 0 = sum, row 1 = sum of squares
    """
    # Elementwise math in f32 (v5e VPU has no bf16); im2col only rearranges/duplicates
    # elements, so applying LeakyReLU to the patches == applying it to the input
    # (spatial zero-padding maps to zero).
    x = x_ref[...].astype(jnp.float32)
    x = jnp.where(x >= 0, x, neg_slope * x)

    acc = jnp.dot(x.astype(w_ref.dtype), w_ref[...],
                  preferred_element_type=jnp.float32)

    y_ref[...] = acc
    s_ref[pl.ds(0, 1), :] = jnp.sum(acc, axis=0, keepdims=True)
    s_ref[pl.ds(1, 1), :] = jnp.sum(acc * acc, axis=0, keepdims=True)


def _bn_affine_kernel(y_ref, scale_ref, shift_ref, o_ref):
    """Second pass: per-channel affine (BN normalize folded with gamma/beta), lane-dense."""
    o_ref[...] = (y_ref[...] * scale_ref[...] + shift_ref[...]).astype(o_ref.dtype)


def _encoder_block_impl(x_nchw, conv_w, conv_b, gamma, beta,
                        *, stride, padding, eps, neg_slope, tile_m):
    del conv_b  # cancels exactly against training-mode BatchNorm's mean subtraction

    N, Cin, H, W = x_nchw.shape
    Cout, Cin2, KH, KW = conv_w.shape
    assert Cin2 == Cin
    OH = (H + 2 * padding - KH) // stride + 1
    OW = (W + 2 * padding - KW) // stride + 1
    M = N * OH * OW
    K = KH * KW * Cin                               # whole conv folded into one contraction
    Cpad = ((Cout + 127) // 128) * 128              # lane-dense output width

    # M tiling (rows per grid step); tm multiple of 8, Mpad multiple of tm.
    tm = max(8, (min(tile_m, M) // 8) * 8)
    grid_m = -(-M // tm)
    Mpad = grid_m * tm

    # ---- wrapper-side layout plumbing (fused by XLA under jit) ----
    # NCHW -> NHWC, cast to bf16 early (halves im2col bytes), zero-pad spatially.
    x = jnp.transpose(x_nchw, (0, 2, 3, 1)).astype(jnp.bfloat16)
    xp = jnp.pad(x, ((0, 0), (padding, padding), (padding, padding), (0, 0)))

    # Full im2col: patches[(n,oh,ow), (kh*KW+kw)*Cin + ci] = xp[n, s*oh+kh, s*ow+kw, ci]
    taps = []
    for kh in range(KH):
        for kw in range(KW):
            taps.append(xp[:, kh::stride, kw::stride, :][:, :OH, :OW, :])
    patches = jnp.concatenate(taps, axis=-1).reshape(M, K)
    if Mpad > M:
        # Zero rows contribute 0 to sum/sumsq and are sliced away afterwards.
        patches = jnp.pad(patches, ((0, Mpad - M), (0, 0)))

    # Weights: (Cout, Cin, KH, KW) -> (K, Cpad), matching the patch ordering, bf16, zero-padded.
    wt = jnp.transpose(conv_w, (2, 3, 1, 0)).reshape(K, Cout).astype(jnp.bfloat16)
    w_pad = jnp.zeros((K, Cpad), jnp.bfloat16).at[:, :Cout].set(wt)

    kernel1 = functools.partial(_conv_stats_kernel, neg_slope=neg_slope)
    conv_slab, stats = pl.pallas_call(
        kernel1,
        out_shape=(
            jax.ShapeDtypeStruct((Mpad, Cpad), jnp.float32),     # pre-BN conv slab
            jax.ShapeDtypeStruct((grid_m, 2, Cpad), jnp.float32) # per-tile (sum, sumsq)
        ),
        grid_spec=pltpu.PrefetchScalarGridSpec(
            num_scalar_prefetch=0,
            grid=(grid_m,),
            in_specs=[
                pl.BlockSpec((tm, K), lambda i: (i, 0)),         # one patch tile per step
                pl.BlockSpec((K, Cpad), lambda i: (0, 0)),       # weights resident
            ],
            out_specs=(
                pl.BlockSpec((tm, Cpad), lambda i: (i, 0)),
                pl.BlockSpec((None, 2, Cpad), lambda i: (i, 0, 0)),
            ),
        ),
        compiler_params=pltpu.CompilerParams(
            dimension_semantics=("parallel",),       # independent M tiles -> megacore on v7x
            vmem_limit_bytes=32 * 1024 * 1024),
    )(patches, w_pad)

    # Combine tiny per-tile partial stats (XLA, a few hundred floats) into one affine.
    tot = jnp.sum(stats, axis=0)                                  # (2, Cpad)
    inv_m = 1.0 / M
    mean = tot[0:1, :] * inv_m                                    # (1, Cpad)
    var = jnp.maximum(tot[1:2, :] * inv_m - mean * mean, 0.0)     # biased batch variance
    g_pad = jnp.zeros((1, Cpad), jnp.float32).at[0, :Cout].set(gamma.astype(jnp.float32))
    b_pad = jnp.zeros((1, Cpad), jnp.float32).at[0, :Cout].set(beta.astype(jnp.float32))
    scale = g_pad * lax.rsqrt(var + eps)
    shift = b_pad - mean * scale

    # Second pass: apply the affine tile-by-tile, in place on the conv slab.
    out_slab = pl.pallas_call(
        _bn_affine_kernel,
        out_shape=jax.ShapeDtypeStruct((Mpad, Cpad), jnp.float32),
        grid_spec=pltpu.PrefetchScalarGridSpec(
            num_scalar_prefetch=0,
            grid=(grid_m,),
            in_specs=[
                pl.BlockSpec((tm, Cpad), lambda i: (i, 0)),
                pl.BlockSpec((1, Cpad), lambda i: (0, 0)),
                pl.BlockSpec((1, Cpad), lambda i: (0, 0)),
            ],
            out_specs=pl.BlockSpec((tm, Cpad), lambda i: (i, 0)),
        ),
        input_output_aliases={0: 0},                 # reuse the conv slab buffer
        compiler_params=pltpu.CompilerParams(
            dimension_semantics=("parallel",),
            vmem_limit_bytes=32 * 1024 * 1024),
    )(conv_slab, scale, shift)

    out = out_slab[:M, :Cout].reshape(N, OH, OW, Cout)
    return jnp.transpose(out, (0, 3, 1, 2))          # back to NCHW


@functools.partial(jax.jit,
                   static_argnames=("stride", "padding", "eps", "neg_slope", "tile_m"))
def encoder_block(x_nchw, conv_w, conv_b, gamma, beta,
                  *, stride=2, padding=1, eps=1e-5, neg_slope=0.2, tile_m=512):
    """EncoderBlock forward (norm=True). x_nchw: (N,Cin,H,W); conv_w: (Cout,Cin,KH,KW)."""
    return _encoder_block_impl(x_nchw, conv_w, conv_b, gamma, beta,
                               stride=stride, padding=padding, eps=eps,
                               neg_slope=neg_slope, tile_m=tile_m)


def _reference(x, conv_w, conv_b, gamma, beta, eps=1e-5):
    fx = jnp.where(x >= 0, x, 0.2 * x)
    fx = lax.conv_general_dilated(fx, conv_w, window_strides=(2, 2),
                                  padding=[(1, 1), (1, 1)],
                                  dimension_numbers=('NCHW', 'OIHW', 'NCHW'))
    fx = fx + conv_b[None, :, None, None]
    mean = jnp.mean(fx, axis=(0, 2, 3), keepdims=True)
    var = jnp.mean((fx - mean) ** 2, axis=(0, 2, 3), keepdims=True)
    fx = (fx - mean) * lax.rsqrt(var + eps)
    return fx * gamma[None, :, None, None] + beta[None, :, None, None]


if __name__ == "__main__":
    # Small shapes consistent with the module: inplanes=4, outplanes=8, 16x16 spatial.
    N, Cin, Cout, H, W, KH, KW = 2, 4, 8, 16, 16, 4, 4

    key = jax.random.PRNGKey(0)
    kx, kw, kb = jax.random.split(key, 3)
    x = jax.random.normal(kx, (N, Cin, H, W), dtype=jnp.float32)

    # Deterministic parameter init (PyTorch-style fan-in bound for conv, BN defaults).
    fan_in = Cin * KH * KW
    bound = 1.0 / (fan_in ** 0.5)
    conv_w = jax.random.uniform(kw, (Cout, Cin, KH, KW), jnp.float32, -bound, bound)
    conv_b = jax.random.uniform(kb, (Cout,), jnp.float32, -bound, bound)
    gamma = jnp.ones((Cout,), jnp.float32)   # BatchNorm2d default weight
    beta = jnp.zeros((Cout,), jnp.float32)   # BatchNorm2d default bias

    out = encoder_block(x, conv_w, conv_b, gamma, beta)
    out = jax.block_until_ready(out)

    ref = _reference(x, conv_w, conv_b, gamma, beta)
    assert out.shape == (N, Cout, H // 2, W // 2), out.shape
    # bf16 operands (f32 accumulation / f32 BN stats) -> ~1e-2-level error vs f32 reference.
    err = float(jnp.max(jnp.abs(out - ref)))
    assert jnp.allclose(out, ref, atol=3e-2, rtol=3e-2), err

    print("KERNEL_OK")
</pallas_src>

<mosaic_0001>
module attributes {stable_mosaic.version = 11 : i64} {
  func.func @_conv_stats_kernel(%arg0: i32, %arg1: memref<128x64xbf16, #tpu.memory_space<vmem>>, %arg2: memref<64x128xbf16, #tpu.memory_space<vmem>>, %arg3: memref<128x128xf32, #tpu.memory_space<vmem>>, %arg4: memref<1x2x128xf32, #tpu.memory_space<vmem>>) attributes {dimension_semantics = [#tpu.dimension_semantics<parallel>], iteration_bounds = array<i64: 1>, scalar_prefetch = 0 : i64, scratch_operands = 0 : i64, tpu.core_type = #tpu.core_type<tc>, window_params = [{transform_indices = @transform_0, window_bounds = array<i64: 128, 64>}, {pipeline_mode = #tpu.pipeline_mode<synchronous>, transform_indices = @transform_1, window_bounds = array<i64: 64, 128>}, {transform_indices = @transform_2, window_bounds = array<i64: 128, 128>}, {transform_indices = @transform_3, window_bounds = array<i64: 1, 2, 128>}]} {
    %c0 = arith.constant 0 : index
    %c0_0 = arith.constant 0 : index
    %0 = vector.load %arg1[%c0, %c0_0] : memref<128x64xbf16, #tpu.memory_space<vmem>>, vector<128x64xbf16>
    %1 = arith.extf %0 : vector<128x64xbf16> to vector<128x64xf32>
    %cst = arith.constant 0.000000e+00 : f32
    %2 = vector.broadcast %cst : f32 to vector<128x64xf32>
    %3 = arith.cmpf oge, %1, %2 : vector<128x64xf32>
    %cst_1 = arith.constant 2.000000e-01 : f32
    %4 = vector.broadcast %cst_1 : f32 to vector<128x64xf32>
    %5 = arith.mulf %4, %1 : vector<128x64xf32>
    %6 = arith.select %3, %1, %5 : vector<128x64xi1>, vector<128x64xf32>
    %7 = arith.truncf %6 : vector<128x64xf32> to vector<128x64xbf16>
    %c0_2 = arith.constant 0 : index
    %c0_3 = arith.constant 0 : index
    %8 = vector.load %arg2[%c0_2, %c0_3] : memref<64x128xbf16, #tpu.memory_space<vmem>>, vector<64x128xbf16>
    %cst_4 = arith.constant dense<0.000000e+00> : vector<128x128xf32>
    %9 = tpu.matmul %7, %8, %cst_4 {dimension_numbers = #tpu.dot_dimension_numbers<[1], [0], [0], [1], [0, 0, 1, 1], [], []>} : vector<128x64xbf16>, vector<64x128xbf16>, vector<128x128xf32> -> vector<128x128xf32>
    %c0_5 = arith.constant 0 : index
    %c0_6 = arith.constant 0 : index
    %10 = vector.load %arg3[%c0_5, %c0_6] : memref<128x128xf32, #tpu.memory_space<vmem>>, vector<128x128xf32>
    tpu.vector_store %arg3[%c0_5, %c0_6], %9 {strides = array<i32>} : memref<128x128xf32, #tpu.memory_space<vmem>>, vector<128x128xf32>,
    %cst_7 = arith.constant dense<0.000000e+00> : vector<128xf32>
    %11 = vector.multi_reduction <add>, %9, %cst_7 [0] : vector<128x128xf32> to vector<128xf32>
    %12 = vector.shape_cast %11 : vector<128xf32> to vector<1x128xf32>
    %c0_8 = arith.constant 0 : index
    %c0_9 = arith.constant 0 : index
    %c0_10 = arith.constant 0 : index
    %13 = vector.load %arg4[%c0_8, %c0_9, %c0_10] : memref<1x2x128xf32, #tpu.memory_space<vmem>>, vector<1x1x128xf32>
    %14 = vector.shape_cast %13 : vector<1x1x128xf32> to vector<1x128xf32>
    %15 = vector.shape_cast %12 : vector<1x128xf32> to vector<1x1x128xf32>
    tpu.vector_store %arg4[%c0_8, %c0_9, %c0_10], %15 {strides = array<i32>} : memref<1x2x128xf32, #tpu.memory_space<vmem>>, vector<1x1x128xf32>,
    %16 = arith.mulf %9, %9 : vector<128x128xf32>
    %cst_11 = arith.constant dense<0.000000e+00> : vector<128xf32>
    %17 = vector.multi_reduction <add>, %16, %cst_11 [0] : vector<128x128xf32> to vector<128xf32>
    %18 = vector.shape_cast %17 : vector<128xf32> to vector<1x128xf32>
    %c0_12 = arith.constant 0 : index
    %c1 = arith.constant 1 : index
    %c0_13 = arith.constant 0 : index
    %19 = vector.load %arg4[%c0_12, %c1, %c0_13] : memref<1x2x128xf32, #tpu.memory_space<vmem>>, vector<1x1x128xf32>
    %20 = vector.shape_cast %19 : vector<1x1x128xf32> to vector<1x128xf32>
    %21 = vector.shape_cast %18 : vector<1x128xf32> to vector<1x1x128xf32>
    tpu.vector_store %arg4[%c0_12, %c1, %c0_13], %21 {strides = array<i32>} : memref<1x2x128xf32, #tpu.memory_space<vmem>>, vector<1x1x128xf32>,
    return
  }
  func.func @transform_0(%arg0: i32) -> (i32, i32) {
    %c0_i32 = arith.constant 0 : i32
    %c0_i32_0 = arith.constant 0 : i32
    return %arg0, %c0_i32 : i32, i32
  }
  func.func @transform_1(%arg0: i32) -> (i32, i32) {
    %c0_i32 = arith.constant 0 : i32
    %c0_i32_0 = arith.constant 0 : i32
    %c0_i32_1 = arith.constant 0 : i32
    return %c0_i32, %c0_i32_0 : i32, i32
  }
  func.func @transform_2(%arg0: i32) -> (i32, i32) {
    %c0_i32 = arith.constant 0 : i32
    %c0_i32_0 = arith.constant 0 : i32
    return %arg0, %c0_i32 : i32, i32
  }
  func.func @transform_3(%arg0: i32) -> (i32, i32, i32) {
    %c0_i32 = arith.constant 0 : i32
    %c0_i32_0 = arith.constant 0 : i32
    %c0_i32_1 = arith.constant 0 : i32
    return %arg0, %c0_i32, %c0_i32_0 : i32, i32, i32
  }
}

module attributes {stable_mosaic.version = 11 : i64} {
  func.func @_bn_affine_kernel(%arg0: i32, %arg1: memref<128x128xf32, #tpu.memory_space<vmem>>, %arg2: memref<1x128xf32, #tpu.memory_space<vmem>>, %arg3: memref<1x128xf32, #tpu.memory_space<vmem>>, %arg4: memref<128x128xf32, #tpu.memory_space<vmem>>) attributes {dimension_semantics = [#tpu.dimension_semantics<parallel>], iteration_bounds = array<i64: 1>, scalar_prefetch = 0 : i64, scratch_operands = 0 : i64, tpu.core_type = #tpu.core_type<tc>, window_params = [{transform_indices = @transform_0, window_bounds = array<i64: 128, 128>}, {pipeline_mode = #tpu.pipeline_mode<synchronous>, transform_indices = @transform_1, window_bounds = array<i64: 1, 128>}, {pipeline_mode = #tpu.pipeline_mode<synchronous>, transform_indices = @transform_2, window_bounds = array<i64: 1, 128>}, {transform_indices = @transform_3, window_bounds = array<i64: 128, 128>}]} {
    %c0 = arith.constant 0 : index
    %c0_0 = arith.constant 0 : index
    %0 = vector.load %arg1[%c0, %c0_0] : memref<128x128xf32, #tpu.memory_space<vmem>>, vector<128x128xf32>
    %c0_1 = arith.constant 0 : index
    %c0_2 = arith.constant 0 : index
    %1 = vector.load %arg2[%c0_1, %c0_2] : memref<1x128xf32, #tpu.memory_space<vmem>>, vector<1x128xf32>
    %2 = vector.broadcast %1 : vector<1x128xf32> to vector<128x128xf32>
    %3 = arith.mulf %0, %2 : vector<128x128xf32>
    %c0_3 = arith.constant 0 : index
    %c0_4 = arith.constant 0 : index
    %4 = vector.load %arg3[%c0_3, %c0_4] : memref<1x128xf32, #tpu.memory_space<vmem>>, vector<1x128xf32>
    %5 = vector.broadcast %4 : vector<1x128xf32> to vector<128x128xf32>
    %6 = arith.addf %3, %5 : vector<128x128xf32>
    %c0_5 = arith.constant 0 : index
    %c0_6 = arith.constant 0 : index
    %7 = vector.load %arg4[%c0_5, %c0_6] : memref<128x128xf32, #tpu.memory_space<vmem>>, vector<128x128xf32>
    tpu.vector_store %arg4[%c0_5, %c0_6], %6 {strides = array<i32>} : memref<128x128xf32, #tpu.memory_space<vmem>>, vector<128x128xf32>,
    return
  }
  func.func @transform_0(%arg0: i32) -> (i32, i32) {
    %c0_i32 = arith.constant 0 : i32
    %c0_i32_0 = arith.constant 0 : i32
    return %arg0, %c0_i32 : i32, i32
  }
  func.func @transform_1(%arg0: i32) -> (i32, i32) {
    %c0_i32 = arith.constant 0 : i32
    %c0_i32_0 = arith.constant 0 : i32
    %c0_i32_1 = arith.constant 0 : i32
    return %c0_i32, %c0_i32_0 : i32, i32
  }
  func.func @transform_2(%arg0: i32) -> (i32, i32) {
    %c0_i32 = arith.constant 0 : i32
    %c0_i32_0 = arith.constant 0 : i32
    %c0_i32_1 = arith.constant 0 : i32
    return %c0_i32, %c0_i32_0 : i32, i32
  }
  func.func @transform_3(%arg0: i32) -> (i32, i32) {
    %c0_i32 = arith.constant 0 : i32
    %c0_i32_0 = arith.constant 0 : i32
    return %arg0, %c0_i32 : i32, i32
  }
}

</mosaic_0001>

<bundles_post_ra>
// kernel: encoder_block.3
= control target key start
LH: loop header
LB: loop body
LE: loop exit
PB: predicated region body
PF: predicated region fallthrough
CT: control target
= control target key end

     0   :  { %s220_s0 = inlined_call_operand.vmem [shape: f32[128,128], index: 0, kind: input, shape index: {}, may-alias: {0,3}]   ;;  %s221_s1 = inlined_call_operand.vmem [shape: f32[1,128], index: 1, kind: input, shape index: {}]   ;;  %s222_s2 = inlined_call_operand.vmem [shape: f32[1,128], index: 2, kind: input, shape index: {}]   ;;  %s223_s3 = inlined_call_operand.vmem [shape: f32[128,128], index: 3, kind: output, shape index: {}, may-alias: {0,3}]  }
   0x1   :  { %v14_v0 = vld [vmem:[%s220_s0] sm:$0xff]  ;;  %v15_v4 = vld [vmem:[%s220_s0 + $0x8] sm:$0xff]  ;;  %v16_v5 = vld [vmem:[%s220_s0 + $0x10] sm:$0xff] }
   0x2   :  { %v96_v1 = vld [vmem:[%s221_s1] ss:$0 sm:$0xff]  ;;  %v17_v6 = vld [vmem:[%s220_s0 + $0x18] sm:$0xff]  ;;  %v19_v11 = vld [vmem:[%s220_s0 + $0x28] sm:$0xff] }
   0x3   :  { %v97_v2 = vld [vmem:[%s222_s2] ss:$0 sm:$0xff]  ;;  %v37_v3 = vmul.f32 %v96_v1, %v14_v0  ;;  %v38_v7 = vmul.f32 %v96_v1, %v15_v4  ;;  %v39_v8 = vmul.f32 %v96_v1, %v16_v5  ;;  %v40_v9 = vmul.f32 %v96_v1, %v17_v6  ;;  %v20_v12 = vld [vmem:[%s220_s0 + $0x30] sm:$0xff]  ;;  %v21_v17 = vld [vmem:[%s220_s0 + $0x38] sm:$0xff] }
   0x4   :  { %v18_v10 = vld [vmem:[%s220_s0 + $0x20] sm:$0xff]  ;;  %v42_v15 = vmul.f32 %v96_v1, %v19_v11  ;;  %v43_v16 = vmul.f32 %v96_v1, %v20_v12  ;;  %v23_v19 = vld [vmem:[%s220_s0 + $0x48] sm:$0xff]  ;;  %v44_v23 = vmul.f32 %v96_v1, %v21_v17  ;;  %v24_v24 = vld [vmem:[%s220_s0 + $0x50] sm:$0xff] }
   0x5   :  { %v60_v13 = vadd.f32 %v97_v2, %v37_v3  ;;  %v41_v14 = vmul.f32 %v96_v1, %v18_v10  ;;  %v22_v18 = vld [vmem:[%s220_s0 + $0x40] sm:$0xff]  ;;  %v61_v20 = vadd.f32 %v97_v2, %v38_v7  ;;  %v62_v21 = vadd.f32 %v97_v2, %v39_v8  ;;  %v25_v25 = vld [vmem:[%s220_s0 + $0x58] sm:$0xff] }
   0x6   :  { %v63_v22 = vadd.f32 %v97_v2, %v40_v9  ;;  %v26_v26 = vld [vmem:[%s220_s0 + $0x60] sm:$0xff]  ;;  %v65_v28 = vadd.f32 %v97_v2, %v42_v15  ;;  %v66_v29 = vadd.f32 %v97_v2, %v43_v16  ;;  %v45_v30 = vmul.f32 %v96_v1, %v22_v18 }
   0x7   :  { %76 = vst [vmem:[%s223_s3] sm:$0xff] %v60_v13  ;;  %v64_v27 = vadd.f32 %v97_v2, %v41_v14  ;;  %v67_v34 = vadd.f32 %v97_v2, %v44_v23  ;;  %v46_v35 = vmul.f32 %v96_v1, %v23_v19  ;;  %v47_v36 = vmul.f32 %v96_v1, %v24_v24 }
   0x8   :  { %v48_v37 = vmul.f32 %v96_v1, %v25_v25  ;;  %v68_v38 = vadd.f32 %v97_v2, %v45_v30  ;;  %v49_v39 = vmul.f32 %v96_v1, %v26_v26 }
   0x9   :  { %v69_v42 = vadd.f32 %v97_v2, %v46_v35  ;;  %v70_v43 = vadd.f32 %v97_v2, %v47_v36 }
   0xa   :  { %v71_v44 = vadd.f32 %v97_v2, %v48_v37  ;;  %v72_v46 = vadd.f32 %v97_v2, %v49_v39 }
   0xe   :  { %v27_v31 = vld [vmem:[%s220_s0 + $0x68] sm:$0xff]  ;;  %v28_v32 = vld [vmem:[%s220_s0 + $0x70] sm:$0xff]  ;;  %v29_v33 = vld [vmem:[%s220_s0 + $0x78] sm:$0xff] }
   0xf   :  { %77 = vst [vmem:[%s223_s3 + $0x8] sm:$0xff] %v61_v20  ;;  %78 = vst [vmem:[%s223_s3 + $0x10] sm:$0xff] %v62_v21  ;;  %v50_v40 = vmul.f32 %v96_v1, %v27_v31  ;;  %v51_v41 = vmul.f32 %v96_v1, %v28_v32  ;;  %v52_v45 = vmul.f32 %v96_v1, %v29_v33 }
  0x10   :  { %79 = vst [vmem:[%s223_s3 + $0x18] sm:$0xff] %v63_v22  ;;  %80 = vst [vmem:[%s223_s3 + $0x20] sm:$0xff] %v64_v27 }
  0x11   :  { %81 = vst [vmem:[%s223_s3 + $0x28] sm:$0xff] %v65_v28  ;;  %82 = vst [vmem:[%s223_s3 + $0x30] sm:$0xff] %v66_v29  ;;  %v73_v47 = vadd.f32 %v97_v2, %v50_v40  ;;  %v74_v48 = vadd.f32 %v97_v2, %v51_v41  ;;  %v75_v49 = vadd.f32 %v97_v2, %v52_v45 }
  0x12   :  { %83 = vst [vmem:[%s223_s3 + $0x38] sm:$0xff] %v67_v34  ;;  %84 = vst [vmem:[%s223_s3 + $0x40] sm:$0xff] %v68_v38 }
  0x13   :  { %85 = vst [vmem:[%s223_s3 + $0x48] sm:$0xff] %v69_v42  ;;  %86 = vst [vmem:[%s223_s3 + $0x50] sm:$0xff] %v70_v43 }
  0x14   :  { %87 = vst [vmem:[%s223_s3 + $0x58] sm:$0xff] %v71_v44  ;;  %88 = vst [vmem:[%s223_s3 + $0x60] sm:$0xff] %v72_v46 }
  0x15   :  { %89 = vst [vmem:[%s223_s3 + $0x68] sm:$0xff] %v73_v47  ;;  %90 = vst [vmem:[%s223_s3 + $0x70] sm:$0xff] %v74_v48 }
  0x16   :  { %91 = vst [vmem:[%s223_s3 + $0x78] sm:$0xff] %v75_v49 }

// kernel: encoder_block.2
= control target key start
LH: loop header
LB: loop body
LE: loop exit
PB: predicated region body
PF: predicated region fallthrough
CT: control target
= control target key end

     0   :  { %vm134_vm4 = vcmask 523264   ;;  %s559_s1 = inlined_call_operand.vmem [shape: bf16[64,128], index: 1, kind: input, shape index: {}]   ;;  %s560_s0 = inlined_call_operand.vmem [shape: bf16[128,64], index: 0, kind: input, shape index: {}]   ;;  %s561_s2 = inlined_call_operand.vmem [shape: f32[128,128], index: 2, kind: output, shape index: {0}]   ;;  %s562_s3 = inlined_call_operand.vmem [shape: f32[1,2,128], index: 3, kind: output, shape index: {1}]  }
   0x1   :  { %v435_v0 = vld [vmem:[%s559_s1 + $0x18] sm:$0xff]   ;;  %v436_v1 = vld [vmem:[%s559_s1 + $0x10] sm:$0xff]   ;;  %v437_v2 = vld [vmem:[%s559_s1 + $0x8] sm:$0xff]  }
   0x2   :  { %403 = vmatprep.subr.bf16.mxu0 %v435_v0  ;;  %427 = vmatprep.subr.bf16.mxu1 %v435_v0  ;;  %v353_v3 = vld [vmem:[%s560_s0] sm:$0xff]   ;;  %v384_v4 = vld [vmem:[%s560_s0 + $0x8] sm:$0xff]   ;;  %v385_v5 = vld [vmem:[%s560_s0 + $0x10] sm:$0xff]  }
   0x3   :  { %404 = vmatpush3.bf16.msra.mxu0 %v435_v0  ;;  %431 = vmatpush3.bf16.msra.mxu1 %v435_v0  ;;  %v354_v6 = vunpack.c.l.bf16 %v353_v3  ;;  %v355_v7 = vunpack.c.h.bf16 %v353_v3  ;;  %v358_v8 = vunpack.c.l.bf16 %v384_v4  ;;  %v359_v9 = vunpack.c.h.bf16 %v384_v4  ;;  %v386_v10 = vld [vmem:[%s560_s0 + $0x18] sm:$0xff]   ;;  %v438_v11 = vld [vmem:[%s559_s1] sm:$0xff]   ;;  %v388_v26 = vld [vmem:[%s560_s0 + $0x28] sm:$0xff]  }
   0x4   :  { %405 = vmatprep.subr.bf16.mxu0 %v436_v1  ;;  %428 = vmatprep.subr.bf16.mxu1 %v436_v1  ;;  %v362_v12 = vunpack.c.l.bf16 %v385_v5  ;;  %v363_v13 = vunpack.c.h.bf16 %v385_v5  ;;  %v366_v14 = vunpack.c.l.bf16 %v386_v10  ;;  %v367_v15 = vunpack.c.h.bf16 %v386_v10  ;;  %v387_v22 = vld [vmem:[%s560_s0 + $0x20] sm:$0xff]   ;;  %v389_v40 = vld [vmem:[%s560_s0 + $0x30] sm:$0xff]   ;;  %v390_v44 = vld [vmem:[%s560_s0 + $0x38] sm:$0xff]  }
   0x5   :  { %vm46_vm0 = vcmp.ge.f32.partialorder %v354_v6, 0.0  ;;  %vm47_vm1 = vcmp.ge.f32.partialorder %v355_v7, 0.0  ;;  %v62_v16 = vmul.f32 0.2, %v354_v6  ;;  %v63_v17 = vmul.f32 0.2, %v355_v7 }
   0x6   :  { %vm48_vm2 = vcmp.ge.f32.partialorder %v358_v8, 0.0  ;;  %vm49_vm3 = vcmp.ge.f32.partialorder %v359_v9, 0.0  ;;  %v64_v18 = vmul.f32 0.2, %v358_v8  ;;  %v65_v19 = vmul.f32 0.2, %v359_v9 }
   0x7   :  { %406 = vmatpush3.bf16.msra.mxu0 %v436_v1  ;;  %432 = vmatpush3.bf16.msra.mxu1 %v436_v1  ;;  %v78_v20 = vsel %vm46_vm0, %v354_v6, %v62_v16  ;;  %v79_v21 = vsel %vm47_vm1, %v355_v7, %v63_v17  ;;  %vm50_vm5 = vcmp.ge.f32.partialorder %v362_v12, 0.0  ;;  %vm51_vm6 = vcmp.ge.f32.partialorder %v363_v13, 0.0 }
   0x8   :  { %407 = vmatprep.subr.bf16.mxu0 %v437_v2  ;;  %429 = vmatprep.subr.bf16.mxu1 %v437_v2  ;;  %v94_v23 = vpack.c.bf16 %v79_v21, %v78_v20  ;;  %v80_v24 = vsel %vm48_vm2, %v358_v8, %v64_v18  ;;  %v66_v25 = vmul.f32 0.2, %v362_v12  ;;  %v81_v27 = vsel %vm49_vm3, %v359_v9, %v65_v19 }
   0x9   :  { %v67_v28 = vmul.f32 0.2, %v363_v13  ;;  %vm52_vm7 = vcmp.ge.f32.partialorder %v366_v14, 0.0  ;;  %vm53_vm8 = vcmp.ge.f32.partialorder %v367_v15, 0.0  ;;  %v68_v30 = vmul.f32 0.2, %v366_v14 }
   0xa   :  { %411 = vmatprep.mubr.msk.bf16.mxu0 %vm134_vm4, %v94_v23  ;;  %v82_v29 = vsel %vm50_vm5, %v362_v12, %v66_v25  ;;  %v69_v31 = vmul.f32 0.2, %v367_v15  ;;  %v370_v32 = vunpack.c.l.bf16 %v387_v22  ;;  %v371_v34 = vunpack.c.h.bf16 %v387_v22 }
   0xb   :  { %408 = vmatpush3.bf16.msra.mxu0 %v437_v2  ;;  %433 = vmatpush3.bf16.msra.mxu1 %v437_v2  ;;  %v83_v33 = vsel %vm51_vm6, %v363_v13, %v67_v28  ;;  %v374_v35 = vunpack.c.l.bf16 %v388_v26  ;;  %v375_v36 = vunpack.c.h.bf16 %v388_v26  ;;  %v95_v37 = vpack.c.bf16 %v81_v27, %v80_v24 }
   0xc   :  { %409 = vmatprep.subr.bf16.mxu0 %v438_v11  ;;  %430 = vmatprep.subr.bf16.mxu1 %v438_v11  ;;  %v96_v38 = vpack.c.bf16 %v83_v33, %v82_v29  ;;  %v84_v39 = vsel %vm52_vm7, %v366_v14, %v68_v30  ;;  %vm54_vm9 = vcmp.ge.f32.partialorder %v370_v32, 0.0  ;;  %v85_v41 = vsel %vm53_vm8, %v367_v15, %v69_v31 }
   0xd   :  { %vm55_vm10 = vcmp.ge.f32.partialorder %v371_v34, 0.0  ;;  %v70_v42 = vmul.f32 0.2, %v370_v32  ;;  %v71_v43 = vmul.f32 0.2, %v371_v34  ;;  %vm56_vm11 = vcmp.ge.f32.partialorder %v374_v35, 0.0 }
   0xe   :  { %vm57_vm12 = vcmp.ge.f32.partialorder %v375_v36, 0.0  ;;  %v72_v45 = vmul.f32 0.2, %v374_v35  ;;  %v73_v46 = vmul.f32 0.2, %v375_v36  ;;  %v378_v49 = vunpack.c.l.bf16 %v389_v40 }
   0xf   :  { %410 = vmatpush3.bf16.msra.mxu0 %v438_v11  ;;  %434 = vmatpush3.bf16.msra.mxu1 %v438_v11  ;;  %v86_v47 = vsel %vm54_vm9, %v370_v32, %v70_v42  ;;  %v87_v48 = vsel %vm55_vm10, %v371_v34, %v71_v43  ;;  %v379_v50 = vunpack.c.h.bf16 %v389_v40  ;;  %v382_v54 = vunpack.c.l.bf16 %v390_v44 }
  0x10   :  { %v98_v51 = vpack.c.bf16 %v87_v48, %v86_v47  ;;  %v88_v52 = vsel %vm56_vm11, %v374_v35, %v72_v45  ;;  %v89_v53 = vsel %vm57_vm12, %v375_v36, %v73_v46  ;;  %vm58_vm13 = vcmp.ge.f32.partialorder %v378_v49, 0.0 }
  0x11   :  { %v99_v55 = vpack.c.bf16 %v89_v53, %v88_v52  ;;  %vm59_vm14 = vcmp.ge.f32.partialorder %v379_v50, 0.0  ;;  %v74_v56 = vmul.f32 0.2, %v378_v49  ;;  %v75_v57 = vmul.f32 0.2, %v379_v50 }
  0x12   :  { %412 = vmatmul.mubr.msk.bf16.vlgmr.msra.gmra.mxu0 %vm134_vm4, %v95_v37  ;;  %419 = vmatprep.mubr.msk.bf16.mxu1 %vm134_vm4, %v98_v51  ;;  %v383_v58 = vunpack.c.h.bf16 %v390_v44  ;;  %vm60_vm15 = vcmp.ge.f32.partialorder %v382_v54, 0.0  ;;  %v76_v59 = vmul.f32 0.2, %v382_v54  ;;  %v97_v60 = vpack.c.bf16 %v85_v41, %v84_v39 }
  0x13   :  { %415 = vmatprep.mubr.msk.bf16.mxu0 %vm134_vm4, %v96_v38  ;;  %420 = vmatmul.mubr.msk.bf16.vlgmr.msra.gmra.mxu1 %vm134_vm4, %v99_v55  ;;  %v90_v61 = vsel %vm58_vm13, %v378_v49, %v74_v56  ;;  %v91_v62 = vsel %vm59_vm14, %v379_v50, %v75_v57 }
  0x14   :  { %vm61_vm0 = vcmp.ge.f32.partialorder %v383_v58, 0.0  ;;  %v77_v63 = vmul.f32 0.2, %v383_v58  ;;  %v92_v0 = vsel %vm60_vm15, %v382_v54, %v76_v59  ;;  %v100_v1 = vpack.c.bf16 %v91_v62, %v90_v61 }
  0x16   :  { %v93_v2 = vsel %vm61_vm0, %v383_v58, %v77_v63  ;;  %423 = vmatprep.mubr.msk.bf16.mxu1 %vm134_vm4, %v100_v1 }
  0x17   :  { %v101_v3 = vpack.c.bf16 %v93_v2, %v92_v0 }
  0x1a   :  { %416 = vmatmul.mubr.msk.bf16.gmra.mxu0 %vm134_vm4, %v97_v60 }
  0x1b   :  { %424 = vmatmul.mubr.msk.bf16.gmra.mxu1 %vm134_vm4, %v101_v3 }
  0xd2   :  { %v413_v4 = vpop.f32.mrf.mxu0 }
  0xd3   :  { %258 = vst [vmem:[%s561_s2 + $0x10] sm:$0xff] %v413_v4  ;;  %v421_v6 = vpop.f32.mrf.mxu1  ;;  %v296_v15 = vmul.f32 %v413_v4, %v413_v4 }
  0xd4   :  { %v193_v5 = vpop.f32.mrf.mxu0  ;;  %266 = vst [vmem:[%s561_s2 + $0x50] sm:$0xff] %v421_v6  ;;  %v304_v47 = vmul.f32 %v421_v6, %v421_v6 }
  0xd5   :  { %256 = vst [vmem:[%s561_s2] sm:$0xff] %v193_v5  ;;  %v225_v8 = vpop.f32.mrf.mxu1  ;;  %v294_v10 = vmul.f32 %v193_v5, %v193_v5 }
  0xd6   :  { %v414_v7 = vpop.f32.mrf.mxu0  ;;  %264 = vst [vmem:[%s561_s2 + $0x40] sm:$0xff] %v225_v8  ;;  %v302_v41 = vmul.f32 %v225_v8, %v225_v8 }
  0xd7   :  { %259 = vst [vmem:[%s561_s2 + $0x18] sm:$0xff] %v414_v7  ;;  %v422_v13 = vpop.f32.mrf.mxu1  ;;  %v297_v20 = vmul.f32 %v414_v7, %v414_v7 }
  0xd8   :  { %v196_v9 = vpop.f32.mrf.mxu0  ;;  %267 = vst [vmem:[%s561_s2 + $0x58] sm:$0xff] %v422_v13  ;;  %v305_v50 = vmul.f32 %v422_v13, %v422_v13 }
  0xd9   :  { %257 = vst [vmem:[%s561_s2 + $0x8] sm:$0xff] %v196_v9  ;;  %v272_v11 = vadd.f32 %v196_v9, %v193_v5  ;;  %v295_v12 = vmul.f32 %v196_v9, %v196_v9  ;;  %v228_v18 = vpop.f32.mrf.mxu1 }
  0xda   :  { %v417_v14 = vpop.f32.mrf.mxu0  ;;  %265 = vst [vmem:[%s561_s2 + $0x48] sm:$0xff] %v228_v18  ;;  %v303_v45 = vmul.f32 %v228_v18, %v228_v18 }
  0xdb   :  { %v273_v16 = vadd.f32 %v413_v4, %v272_v11  ;;  %v310_v17 = vadd.f32 %v295_v12, %v294_v10  ;;  %262 = vst [vmem:[%s561_s2 + $0x30] sm:$0xff] %v417_v14  ;;  %v425_v23 = vpop.f32.mrf.mxu1  ;;  %v300_v34 = vmul.f32 %v417_v14, %v417_v14 }
  0xdc   :  { %v209_v19 = vpop.f32.mrf.mxu0  ;;  %270 = vst [vmem:[%s561_s2 + $0x70] sm:$0xff] %v425_v23  ;;  %v308_v59 = vmul.f32 %v425_v23, %v425_v23 }
  0xdd   :  { %v311_v21 = vadd.f32 %v310_v17, %v296_v15  ;;  %260 = vst [vmem:[%s561_s2 + $0x20] sm:$0xff] %v209_v19  ;;  %v274_v22 = vadd.f32 %v414_v7, %v273_v16  ;;  %v298_v26 = vmul.f32 %v209_v19, %v209_v19  ;;  %v241_v28 = vpop.f32.mrf.mxu1 }
  0xde   :  { %v418_v24 = vpop.f32.mrf.mxu0  ;;  %268 = vst [vmem:[%s561_s2 + $0x60] sm:$0xff] %v241_v28  ;;  %v306_v54 = vmul.f32 %v241_v28, %v241_v28 }
  0xdf   :  { %v275_v25 = vadd.f32 %v274_v22, %v209_v19  ;;  %v312_v27 = vadd.f32 %v311_v21, %v297_v20  ;;  %263 = vst [vmem:[%s561_s2 + $0x38] sm:$0xff] %v418_v24  ;;  %v426_v33 = vpop.f32.mrf.mxu1  ;;  %v301_v38 = vmul.f32 %v418_v24, %v418_v24 }
  0xe0   :  { %v212_v29 = vpop.f32.mrf.mxu0  ;;  %271 = vst [vmem:[%s561_s2 + $0x78] sm:$0xff] %v426_v33  ;;  %v309_v62 = vmul.f32 %v426_v33, %v426_v33 }
  0xe1   :  { %v313_v30 = vadd.f32 %v312_v27, %v298_v26  ;;  %261 = vst [vmem:[%s561_s2 + $0x28] sm:$0xff] %v212_v29  ;;  %v276_v31 = vadd.f32 %v275_v25, %v212_v29  ;;  %v299_v32 = vmul.f32 %v212_v29, %v212_v29  ;;  %v244_v37 = vpop.f32.mrf.mxu1 }
  0xe2   :  { %269 = vst [vmem:[%s561_s2 + $0x68] sm:$0xff] %v244_v37  ;;  %v307_v58 = vmul.f32 %v244_v37, %v244_v37 }
  0xe3   :  { %v277_v35 = vadd.f32 %v417_v14, %v276_v31  ;;  %v314_v36 = vadd.f32 %v313_v30, %v299_v32 }
  0xe5   :  { %v278_v39 = vadd.f32 %v418_v24, %v277_v35  ;;  %v315_v40 = vadd.f32 %v314_v36, %v300_v34 }
  0xe7   :  { %v316_v42 = vadd.f32 %v315_v40, %v301_v38  ;;  %v279_v43 = vadd.f32 %v278_v39, %v225_v8 }
  0xe9   :  { %v280_v44 = vadd.f32 %v279_v43, %v228_v18  ;;  %v317_v46 = vadd.f32 %v316_v42, %v302_v41 }
  0xeb   :  { %v281_v48 = vadd.f32 %v421_v6, %v280_v44  ;;  %v318_v49 = vadd.f32 %v317_v46, %v303_v45 }
  0xed   :  { %v319_v51 = vadd.f32 %v318_v49, %v304_v47  ;;  %v282_v52 = vadd.f32 %v422_v13, %v281_v48 }
  0xef   :  { %v283_v53 = vadd.f32 %v282_v52, %v241_v28  ;;  %v320_v55 = vadd.f32 %v319_v51, %v305_v50 }
  0xf1   :  { %v321_v56 = vadd.f32 %v320_v55, %v306_v54  ;;  %v284_v57 = vadd.f32 %v283_v53, %v244_v37 }
  0xf3   :  { %v285_v60 = vadd.f32 %v425_v23, %v284_v57  ;;  %v322_v61 = vadd.f32 %v321_v56, %v307_v58 }
  0xf5   :  { %v286_v63 = vadd.f32 %v426_v33, %v285_v60  ;;  %v323_v0 = vadd.f32 %v322_v61, %v308_v59 }
  0xf7   :  { %v287_v1 = vrot.slane %v286_v63, 4  ;;  %v324_v2 = vadd.f32 %v323_v0, %v309_v62 }
  0xf9   :  { %v288_v3 = vadd.f32 %v287_v1, %v286_v63  ;;  %v325_v4 = vrot.slane %v324_v2, 4 }
  0xfb   :  { %v289_v5 = vrot.slane %v288_v3, 2  ;;  %v326_v6 = vadd.f32 %v325_v4, %v324_v2 }
  0xfd   :  { %v290_v7 = vadd.f32 %v289_v5, %v288_v3  ;;  %v327_v8 = vrot.slane %v326_v6, 2 }
  0xff   :  { %v291_v9 = vrot.slane %v290_v7, 1  ;;  %v328_v10 = vadd.f32 %v327_v8, %v326_v6 }
 0x101   :  { %v292_v11 = vadd.f32 %v291_v9, %v290_v7  ;;  %v329_v12 = vrot.slane %v328_v10, 1 }
 0x103   :  { %293 = vst [vmem:[%s562_s3] sm:$0x1] %v292_v11  ;;  %v330_v13 = vadd.f32 %v329_v12, %v328_v10 }
 0x105   :  { %331 = vst [vmem:[%s562_s3 + $0x1] sm:$0x1] %v330_v13 }

</bundles_post_ra>
